<compile_context>
chip_gen: v6e
topology: v6e:2x2x1
jax: 0.10.0
libtpu: 0.0.40
codegen_flags: <defaults>
</compile_context>

<pallas_src>
import functools

import jax
import jax.numpy as jnp
from jax import lax
from jax.experimental import pallas as pl
from jax.experimental.pallas import tpu as pltpu


def _round_up(x, m):
    return (x + m - 1) // m * m


def _vmem_capacity_bytes():
    """Per-core VMEM capacity; conservative default if the query fails."""
    try:
        info = pltpu.get_tpu_info()
        cap = getattr(info, "vmem_capacity_bytes", None)
        if cap:
            return int(cap)
    except Exception:
        pass
    return 64 * 1024 * 1024  # v7x per-TensorCore VMEM (smallest current part)


# --------------------------------------------------------------------------
# Primary path: embedding tables resident in VMEM, in-kernel dynamic gather.
# --------------------------------------------------------------------------
def _w2v_vmem_kernel(tgt_ids, ctx_ids,        # scalar-prefetch int32 refs (SMEM)
                     tw_ref, cw_ref,          # full embedding tables in VMEM
                     o_ref,                   # (Bt, C) output block
                     h_buf, u_buf,            # VMEM scratch: (Bt, E), (C*Bt, E)
                     *, bt, ct, batch):
    base = pl.program_id(0) * bt
    # Only gather real rows; padded tail rows in the last tile are skipped.
    rows = jnp.minimum(bt, batch - base)

    def gather_row(b, carry):
        tid = tgt_ids[base + b]
        h_buf[pl.ds(b, 1), :] = tw_ref[pl.ds(tid, 1), :]
        for c in range(ct):                      # C is small; unrolled at trace
            cid = ctx_ids[(base + b) * ct + c]
            u_buf[pl.ds(c * bt + b, 1), :] = cw_ref[pl.ds(cid, 1), :]
        return carry

    lax.fori_loop(0, rows, gather_row, 0)

    # dot[b, c] = sum_e h[b, e] * u[b, c, e].  Accumulate one context column at
    # a time over contiguous (Bt, E) slices so the (Bt, C, E) broadcast is
    # never materialized; always accumulate in f32 (tables may be bf16).
    h = h_buf[...].astype(jnp.float32)                          # (Bt, E)
    cols = []
    for c in range(ct):
        u_c = u_buf[pl.ds(c * bt, bt), :].astype(jnp.float32)   # static slice
        cols.append(jnp.sum(h * u_c, axis=-1, keepdims=True))   # (Bt, 1)
    dot = jnp.concatenate(cols, axis=-1)                        # (Bt, C)
    o_ref[...] = jax.nn.sigmoid(dot).astype(o_ref.dtype)


# --------------------------------------------------------------------------
# Fallback path: tables stay in HBM, per-row gather DMAs (large vocabs only).
# --------------------------------------------------------------------------
def _w2v_hbm_kernel(tgt_ids, ctx_ids,         # scalar-prefetch int32 refs (SMEM)
                    tw_hbm, cw_hbm,           # embedding tables left in HBM
                    o_ref,                    # (Bt, C) output block
                    h_buf, u_buf,             # VMEM scratch
                    h_sem, u_sem,             # DMA semaphores
                    *, bt, ct):
    base = pl.program_id(0) * bt

    # Issue every gather DMA for this tile before waiting so copies overlap.
    for b in range(bt):
        tid = tgt_ids[base + b]
        pltpu.make_async_copy(tw_hbm.at[tid], h_buf.at[b], h_sem.at[b]).start()
        for c in range(ct):
            cid = ctx_ids[(base + b) * ct + c]
            pltpu.make_async_copy(cw_hbm.at[cid], u_buf.at[b, c],
                                  u_sem.at[b, c]).start()

    # Wait (src index in the wait descriptor is a dummy; shapes/sem must match).
    for b in range(bt):
        pltpu.make_async_copy(tw_hbm.at[0], h_buf.at[b], h_sem.at[b]).wait()
        for c in range(ct):
            pltpu.make_async_copy(cw_hbm.at[0], u_buf.at[b, c],
                                  u_sem.at[b, c]).wait()

    h = h_buf[...].astype(jnp.float32)            # (Bt, E)
    u = u_buf[...].astype(jnp.float32)            # (Bt, C, E)
    dot = jnp.sum(h[:, None, :] * u, axis=-1)     # (Bt, C)
    o_ref[...] = jax.nn.sigmoid(dot).astype(o_ref.dtype)


def word2vec_predictions(target_word_id, context_word_ids,
                         target_weight, context_weight, *, block_b=None):
    """sigmoid(einsum('be,bce->bc', tw[tgt], cw[ctx])) with fused gathers."""
    B = target_word_id.shape[0]
    C = context_word_ids.shape[1]
    V, E = target_weight.shape
    itemsize = jnp.dtype(target_weight.dtype).itemsize

    vmem_cap = _vmem_capacity_bytes()
    table_bytes = 2 * V * E * itemsize
    # Keep VMEM-resident tables only if they leave headroom for scratch,
    # output double-buffers and pipeline slack (tighter on 64 MiB v7x parts).
    tables_fit = table_bytes <= int(0.5 * vmem_cap)

    if block_b is None:
        if tables_fit:
            # Big tiles amortize the ~0.35 us/grid-step overhead; keep >= 2
            # grid steps when the batch allows so both v7x cores get work.
            per_tile = pl.cdiv(B, 2) if B >= 16 else B
            block_b = max(8, min(128, _round_up(per_tile, 8)))
        else:
            block_b = min(16, _round_up(B, 8))   # unrolled DMA path: keep small
    block_b = max(8, _round_up(block_b, 8))
    b_pad = _round_up(B, block_b)
    grid = (b_pad // block_b,)

    # Pad ids to the tile boundary (id 0 is a valid row; padded outputs are
    # sliced off).  ctx ids are flattened 1-D to minimize SMEM padding.
    tgt = jnp.zeros((b_pad,), jnp.int32).at[:B].set(
        target_word_id.astype(jnp.int32))
    ctx = jnp.zeros((b_pad, C), jnp.int32).at[:B].set(
        context_word_ids.astype(jnp.int32)).reshape(-1)

    if tables_fit:
        scratch_bytes = (block_b * E + C * block_b * E) * itemsize
        needed = table_bytes + scratch_bytes + 2 * block_b * C * 4
        vmem_limit = int(min(max(32 * 1024 * 1024, needed + (8 << 20)),
                             int(0.9 * vmem_cap), 128 * 1024 * 1024))
        kernel = functools.partial(_w2v_vmem_kernel, bt=block_b, ct=C, batch=B)
        out = pl.pallas_call(
            kernel,
            out_shape=jax.ShapeDtypeStruct((b_pad, C), jnp.float32),
            grid_spec=pltpu.PrefetchScalarGridSpec(
                num_scalar_prefetch=2,
                grid=grid,
                in_specs=[
                    # Full tables, constant block index -> copied to VMEM once.
                    pl.BlockSpec((V, E), lambda i, t, c: (0, 0)),
                    pl.BlockSpec((V, E), lambda i, t, c: (0, 0)),
                ],
                out_specs=pl.BlockSpec((block_b, C), lambda i, t, c: (i, 0)),
                scratch_shapes=[
                    pltpu.VMEM((block_b, E), target_weight.dtype),
                    pltpu.VMEM((C * block_b, E), context_weight.dtype),
                ]),
            compiler_params=pltpu.CompilerParams(
                dimension_semantics=("parallel",),
                vmem_limit_bytes=vmem_limit),
            cost_estimate=pl.CostEstimate(
                flops=2 * b_pad * C * E,
                transcendentals=b_pad * C,
                bytes_accessed=int(table_bytes + 4 * b_pad * (1 + C)
                                   + 4 * b_pad * C)),
        )(tgt, ctx, target_weight, context_weight)
    else:
        # TODO(synk): double-buffer these gather DMAs across grid steps, use
        # loop-based issue with per-row semaphores, and dedupe repeated ids.
        kernel = functools.partial(_w2v_hbm_kernel, bt=block_b, ct=C)
        out = pl.pallas_call(
            kernel,
            out_shape=jax.ShapeDtypeStruct((b_pad, C), jnp.float32),
            grid_spec=pltpu.PrefetchScalarGridSpec(
                num_scalar_prefetch=2,
                grid=grid,
                in_specs=[
                    pl.BlockSpec(memory_space=pl.ANY),   # target table in HBM
                    pl.BlockSpec(memory_space=pl.ANY),   # context table in HBM
                ],
                out_specs=pl.BlockSpec((block_b, C), lambda i, t, c: (i, 0)),
                scratch_shapes=[
                    pltpu.VMEM((block_b, E), target_weight.dtype),
                    pltpu.VMEM((block_b, C, E), context_weight.dtype),
                    pltpu.SemaphoreType.DMA((block_b,)),
                    pltpu.SemaphoreType.DMA((block_b, C)),
                ]),
            compiler_params=pltpu.CompilerParams(
                dimension_semantics=("parallel",),
                vmem_limit_bytes=int(min(64 * 1024 * 1024, int(0.9 * vmem_cap)))),
            cost_estimate=pl.CostEstimate(
                flops=2 * b_pad * C * E,
                transcendentals=b_pad * C,
                bytes_accessed=int(itemsize * (b_pad * E + b_pad * C * E)
                                   + 4 * b_pad * C)),
        )(tgt, ctx, target_weight, context_weight)

    return out[:B]


class Word2VecPallas:
    """JAX/Pallas port of the PyTorch Word2Vec module (forward pass).

    param_dtype=jnp.bfloat16 halves gather/table bytes (f32 accumulation is
    kept in-kernel); the self-test below uses f32 so it can compare with a
    tight tolerance against the f32 reference.
    """

    def __init__(self, vocab_size, embedding_size, key, param_dtype=jnp.float32):
        self.vocab_size = vocab_size
        self.embedding_size = embedding_size
        init_range = 0.5 / vocab_size
        k1, k2 = jax.random.split(key)
        # torch.rand(...) * 2*r - r  ==  uniform(-r, r)
        self.target_weight = jax.random.uniform(
            k1, (vocab_size, embedding_size), jnp.float32,
            minval=-init_range, maxval=init_range).astype(param_dtype)
        self.context_weight = jax.random.uniform(
            k2, (vocab_size, embedding_size), jnp.float32,
            minval=-init_range, maxval=init_range).astype(param_dtype)

    def __call__(self, target_word_id, context_word_ids):
        return word2vec_predictions(target_word_id, context_word_ids,
                                    self.target_weight, self.context_weight)


def _reference(model, target_word_id, context_word_ids):
    h = jnp.take(model.target_weight, target_word_id, axis=0).astype(jnp.float32)
    u = jnp.take(model.context_weight, context_word_ids, axis=0).astype(jnp.float32)
    dot = jnp.einsum("be,bce->bc", h, u)
    return jax.nn.sigmoid(dot)


if __name__ == "__main__":
    key = jax.random.PRNGKey(0)
    k_model, k_tgt, k_ctx = jax.random.split(key, 3)

    vocab_size = 64
    embedding_size = 32
    batch = 2
    num_context = 8   # positive + negative context samples per target

    model = Word2VecPallas(vocab_size, embedding_size, k_model)

    target_word_id = jax.random.randint(k_tgt, (batch,), 0, vocab_size)
    context_word_ids = jax.random.randint(k_ctx, (batch, num_context), 0, vocab_size)

    preds = model(target_word_id, context_word_ids)
    preds = jax.block_until_ready(preds)

    ref = _reference(model, target_word_id, context_word_ids)
    assert preds.shape == (batch, num_context)
    assert jnp.allclose(preds, ref, atol=1e-6, rtol=1e-6), "mismatch vs reference"

    print("KERNEL_OK")
</pallas_src>

<mosaic_0001>
module attributes {stable_mosaic.version = 11 : i64} {
  func.func @_w2v_vmem_kernel(%arg0: i32, %arg1: memref<8xi32, #tpu.memory_space<smem>>, %arg2: memref<64xi32, #tpu.memory_space<smem>>, %arg3: memref<64x32xf32, #tpu.memory_space<vmem>>, %arg4: memref<64x32xf32, #tpu.memory_space<vmem>>, %arg5: memref<8x8xf32, #tpu.memory_space<vmem>>, %arg6: memref<8x32xf32, #tpu.memory_space<vmem>>, %arg7: memref<64x32xf32, #tpu.memory_space<vmem>>) attributes {dimension_semantics = [#tpu.dimension_semantics<parallel>], iteration_bounds = array<i64: 1>, scalar_prefetch = 2 : i64, scratch_operands = 2 : i64, tpu.core_type = #tpu.core_type<tc>, window_params = [{pipeline_mode = #tpu.pipeline_mode<synchronous>, transform_indices = @transform_0, window_bounds = array<i64: 64, 32>}, {pipeline_mode = #tpu.pipeline_mode<synchronous>, transform_indices = @transform_1, window_bounds = array<i64: 64, 32>}, {transform_indices = @transform_2, window_bounds = array<i64: 8, 8>}]} {
    %c8_i32 = arith.constant 8 : i32
    %0 = arith.muli %arg0, %c8_i32 : i32
    %c2_i32 = arith.constant 2 : i32
    %1 = arith.subi %c2_i32, %0 : i32
    %c8_i32_0 = arith.constant 8 : i32
    %2 = arith.minsi %c8_i32_0, %1 : i32
    %c0_i32 = arith.constant 0 : i32
    %c0_i32_1 = arith.constant 0 : i32
    %3 = arith.subi %2, %c0_i32_1 : i32
    %4 = arith.addi %c0_i32_1, %3 : i32
    %c1_i32 = arith.constant 1 : i32
    scf.for %arg8 = %c0_i32_1 to %4 step %c1_i32  : i32 {
      %45 = arith.addi %0, %arg8 : i32
      %46 = arith.index_cast %45 : i32 to index
      %47 = memref.load %arg1[%46] : memref<8xi32, #tpu.memory_space<smem>>
      %48 = arith.index_cast %47 : i32 to index
      %c0_22 = arith.constant 0 : index
      %49 = vector.load %arg3[%48, %c0_22] : memref<64x32xf32, #tpu.memory_space<vmem>>, vector<1x32xf32>
      %50 = arith.index_cast %arg8 : i32 to index
      %c0_23 = arith.constant 0 : index
      %51 = vector.load %arg6[%50, %c0_23] : memref<8x32xf32, #tpu.memory_space<vmem>>, vector<1x32xf32>
      tpu.vector_store %arg6[%50, %c0_23], %49 {strides = array<i32>} : memref<8x32xf32, #tpu.memory_space<vmem>>, vector<1x32xf32>,
      %52 = arith.addi %0, %arg8 : i32
      %c8_i32_24 = arith.constant 8 : i32
      %53 = arith.muli %52, %c8_i32_24 : i32
      %c0_i32_25 = arith.constant 0 : i32
      %54 = arith.addi %53, %c0_i32_25 : i32
      %55 = arith.index_cast %54 : i32 to index
      %56 = memref.load %arg2[%55] : memref<64xi32, #tpu.memory_space<smem>>
      %57 = arith.index_cast %56 : i32 to index
      %c0_26 = arith.constant 0 : index
      %58 = vector.load %arg4[%57, %c0_26] : memref<64x32xf32, #tpu.memory_space<vmem>>, vector<1x32xf32>
      %c0_i32_27 = arith.constant 0 : i32
      %59 = arith.addi %c0_i32_27, %arg8 : i32
      %60 = arith.index_cast %59 : i32 to index
      %c0_28 = arith.constant 0 : index
      %61 = vector.load %arg7[%60, %c0_28] : memref<64x32xf32, #tpu.memory_space<vmem>>, vector<1x32xf32>
      tpu.vector_store %arg7[%60, %c0_28], %58 {strides = array<i32>} : memref<64x32xf32, #tpu.memory_space<vmem>>, vector<1x32xf32>,
      %62 = arith.addi %0, %arg8 : i32
      %c8_i32_29 = arith.constant 8 : i32
      %63 = arith.muli %62, %c8_i32_29 : i32
      %c1_i32_30 = arith.constant 1 : i32
      %64 = arith.addi %63, %c1_i32_30 : i32
      %65 = arith.index_cast %64 : i32 to index
      %66 = memref.load %arg2[%65] : memref<64xi32, #tpu.memory_space<smem>>
      %67 = arith.index_cast %66 : i32 to index
      %c0_31 = arith.constant 0 : index
      %68 = vector.load %arg4[%67, %c0_31] : memref<64x32xf32, #tpu.memory_space<vmem>>, vector<1x32xf32>
      %c8_i32_32 = arith.constant 8 : i32
      %69 = arith.addi %c8_i32_32, %arg8 : i32
      %70 = arith.index_cast %69 : i32 to index
      %c0_33 = arith.constant 0 : index
      %71 = vector.load %arg7[%70, %c0_33] : memref<64x32xf32, #tpu.memory_space<vmem>>, vector<1x32xf32>
      tpu.vector_store %arg7[%70, %c0_33], %68 {strides = array<i32>} : memref<64x32xf32, #tpu.memory_space<vmem>>, vector<1x32xf32>,
      %72 = arith.addi %0, %arg8 : i32
      %c8_i32_34 = arith.constant 8 : i32
      %73 = arith.muli %72, %c8_i32_34 : i32
      %c2_i32_35 = arith.constant 2 : i32
      %74 = arith.addi %73, %c2_i32_35 : i32
      %75 = arith.index_cast %74 : i32 to index
      %76 = memref.load %arg2[%75] : memref<64xi32, #tpu.memory_space<smem>>
      %77 = arith.index_cast %76 : i32 to index
      %c0_36 = arith.constant 0 : index
      %78 = vector.load %arg4[%77, %c0_36] : memref<64x32xf32, #tpu.memory_space<vmem>>, vector<1x32xf32>
      %c16_i32 = arith.constant 16 : i32
      %79 = arith.addi %c16_i32, %arg8 : i32
      %80 = arith.index_cast %79 : i32 to index
      %c0_37 = arith.constant 0 : index
      %81 = vector.load %arg7[%80, %c0_37] : memref<64x32xf32, #tpu.memory_space<vmem>>, vector<1x32xf32>
      tpu.vector_store %arg7[%80, %c0_37], %78 {strides = array<i32>} : memref<64x32xf32, #tpu.memory_space<vmem>>, vector<1x32xf32>,
      %82 = arith.addi %0, %arg8 : i32
      %c8_i32_38 = arith.constant 8 : i32
      %83 = arith.muli %82, %c8_i32_38 : i32
      %c3_i32 = arith.constant 3 : i32
      %84 = arith.addi %83, %c3_i32 : i32
      %85 = arith.index_cast %84 : i32 to index
      %86 = memref.load %arg2[%85] : memref<64xi32, #tpu.memory_space<smem>>
      %87 = arith.index_cast %86 : i32 to index
      %c0_39 = arith.constant 0 : index
      %88 = vector.load %arg4[%87, %c0_39] : memref<64x32xf32, #tpu.memory_space<vmem>>, vector<1x32xf32>
      %c24_i32 = arith.constant 24 : i32
      %89 = arith.addi %c24_i32, %arg8 : i32
      %90 = arith.index_cast %89 : i32 to index
      %c0_40 = arith.constant 0 : index
      %91 = vector.load %arg7[%90, %c0_40] : memref<64x32xf32, #tpu.memory_space<vmem>>, vector<1x32xf32>
      tpu.vector_store %arg7[%90, %c0_40], %88 {strides = array<i32>} : memref<64x32xf32, #tpu.memory_space<vmem>>, vector<1x32xf32>,
      %92 = arith.addi %0, %arg8 : i32
      %c8_i32_41 = arith.constant 8 : i32
      %93 = arith.muli %92, %c8_i32_41 : i32
      %c4_i32 = arith.constant 4 : i32
      %94 = arith.addi %93, %c4_i32 : i32
      %95 = arith.index_cast %94 : i32 to index
      %96 = memref.load %arg2[%95] : memref<64xi32, #tpu.memory_space<smem>>
      %97 = arith.index_cast %96 : i32 to index
      %c0_42 = arith.constant 0 : index
      %98 = vector.load %arg4[%97, %c0_42] : memref<64x32xf32, #tpu.memory_space<vmem>>, vector<1x32xf32>
      %c32_i32 = arith.constant 32 : i32
      %99 = arith.addi %c32_i32, %arg8 : i32
      %100 = arith.index_cast %99 : i32 to index
      %c0_43 = arith.constant 0 : index
      %101 = vector.load %arg7[%100, %c0_43] : memref<64x32xf32, #tpu.memory_space<vmem>>, vector<1x32xf32>
      tpu.vector_store %arg7[%100, %c0_43], %98 {strides = array<i32>} : memref<64x32xf32, #tpu.memory_space<vmem>>, vector<1x32xf32>,
      %102 = arith.addi %0, %arg8 : i32
      %c8_i32_44 = arith.constant 8 : i32
      %103 = arith.muli %102, %c8_i32_44 : i32
      %c5_i32 = arith.constant 5 : i32
      %104 = arith.addi %103, %c5_i32 : i32
      %105 = arith.index_cast %104 : i32 to index
      %106 = memref.load %arg2[%105] : memref<64xi32, #tpu.memory_space<smem>>
      %107 = arith.index_cast %106 : i32 to index
      %c0_45 = arith.constant 0 : index
      %108 = vector.load %arg4[%107, %c0_45] : memref<64x32xf32, #tpu.memory_space<vmem>>, vector<1x32xf32>
      %c40_i32 = arith.constant 40 : i32
      %109 = arith.addi %c40_i32, %arg8 : i32
      %110 = arith.index_cast %109 : i32 to index
      %c0_46 = arith.constant 0 : index
      %111 = vector.load %arg7[%110, %c0_46] : memref<64x32xf32, #tpu.memory_space<vmem>>, vector<1x32xf32>
      tpu.vector_store %arg7[%110, %c0_46], %108 {strides = array<i32>} : memref<64x32xf32, #tpu.memory_space<vmem>>, vector<1x32xf32>,
      %112 = arith.addi %0, %arg8 : i32
      %c8_i32_47 = arith.constant 8 : i32
      %113 = arith.muli %112, %c8_i32_47 : i32
      %c6_i32 = arith.constant 6 : i32
      %114 = arith.addi %113, %c6_i32 : i32
      %115 = arith.index_cast %114 : i32 to index
      %116 = memref.load %arg2[%115] : memref<64xi32, #tpu.memory_space<smem>>
      %117 = arith.index_cast %116 : i32 to index
      %c0_48 = arith.constant 0 : index
      %118 = vector.load %arg4[%117, %c0_48] : memref<64x32xf32, #tpu.memory_space<vmem>>, vector<1x32xf32>
      %c48_i32 = arith.constant 48 : i32
      %119 = arith.addi %c48_i32, %arg8 : i32
      %120 = arith.index_cast %119 : i32 to index
      %c0_49 = arith.constant 0 : index
      %121 = vector.load %arg7[%120, %c0_49] : memref<64x32xf32, #tpu.memory_space<vmem>>, vector<1x32xf32>
      tpu.vector_store %arg7[%120, %c0_49], %118 {strides = array<i32>} : memref<64x32xf32, #tpu.memory_space<vmem>>, vector<1x32xf32>,
      %122 = arith.addi %0, %arg8 : i32
      %c8_i32_50 = arith.constant 8 : i32
      %123 = arith.muli %122, %c8_i32_50 : i32
      %c7_i32 = arith.constant 7 : i32
      %124 = arith.addi %123, %c7_i32 : i32
      %125 = arith.index_cast %124 : i32 to index
      %126 = memref.load %arg2[%125] : memref<64xi32, #tpu.memory_space<smem>>
      %127 = arith.index_cast %126 : i32 to index
      %c0_51 = arith.constant 0 : index
      %128 = vector.load %arg4[%127, %c0_51] : memref<64x32xf32, #tpu.memory_space<vmem>>, vector<1x32xf32>
      %c56_i32 = arith.constant 56 : i32
      %129 = arith.addi %c56_i32, %arg8 : i32
      %130 = arith.index_cast %129 : i32 to index
      %c0_52 = arith.constant 0 : index
      %131 = vector.load %arg7[%130, %c0_52] : memref<64x32xf32, #tpu.memory_space<vmem>>, vector<1x32xf32>
      tpu.vector_store %arg7[%130, %c0_52], %128 {strides = array<i32>} : memref<64x32xf32, #tpu.memory_space<vmem>>, vector<1x32xf32>,
    }
    %c0 = arith.constant 0 : index
    %c0_2 = arith.constant 0 : index
    %5 = vector.load %arg6[%c0, %c0_2] : memref<8x32xf32, #tpu.memory_space<vmem>>, vector<8x32xf32>
    %c0_3 = arith.constant 0 : index
    %c0_4 = arith.constant 0 : index
    %6 = vector.load %arg7[%c0_3, %c0_4] : memref<64x32xf32, #tpu.memory_space<vmem>>, vector<8x32xf32>
    %7 = arith.mulf %5, %6 : vector<8x32xf32>
    %cst = arith.constant dense<0.000000e+00> : vector<8xf32>
    %8 = vector.multi_reduction <add>, %7, %cst [1] : vector<8x32xf32> to vector<8xf32>
    %9 = vector.shape_cast %8 : vector<8xf32> to vector<8x1xf32>
    %c8 = arith.constant 8 : index
    %c0_5 = arith.constant 0 : index
    %10 = vector.load %arg7[%c8, %c0_5] : memref<64x32xf32, #tpu.memory_space<vmem>>, vector<8x32xf32>
    %11 = arith.mulf %5, %10 : vector<8x32xf32>
    %cst_6 = arith.constant dense<0.000000e+00> : vector<8xf32>
    %12 = vector.multi_reduction <add>, %11, %cst_6 [1] : vector<8x32xf32> to vector<8xf32>
    %13 = vector.shape_cast %12 : vector<8xf32> to vector<8x1xf32>
    %c16 = arith.constant 16 : index
    %c0_7 = arith.constant 0 : index
    %14 = vector.load %arg7[%c16, %c0_7] : memref<64x32xf32, #tpu.memory_space<vmem>>, vector<8x32xf32>
    %15 = arith.mulf %5, %14 : vector<8x32xf32>
    %cst_8 = arith.constant dense<0.000000e+00> : vector<8xf32>
    %16 = vector.multi_reduction <add>, %15, %cst_8 [1] : vector<8x32xf32> to vector<8xf32>
    %17 = vector.shape_cast %16 : vector<8xf32> to vector<8x1xf32>
    %c24 = arith.constant 24 : index
    %c0_9 = arith.constant 0 : index
    %18 = vector.load %arg7[%c24, %c0_9] : memref<64x32xf32, #tpu.memory_space<vmem>>, vector<8x32xf32>
    %19 = arith.mulf %5, %18 : vector<8x32xf32>
    %cst_10 = arith.constant dense<0.000000e+00> : vector<8xf32>
    %20 = vector.multi_reduction <add>, %19, %cst_10 [1] : vector<8x32xf32> to vector<8xf32>
    %21 = vector.shape_cast %20 : vector<8xf32> to vector<8x1xf32>
    %c32 = arith.constant 32 : index
    %c0_11 = arith.constant 0 : index
    %22 = vector.load %arg7[%c32, %c0_11] : memref<64x32xf32, #tpu.memory_space<vmem>>, vector<8x32xf32>
    %23 = arith.mulf %5, %22 : vector<8x32xf32>
    %cst_12 = arith.constant dense<0.000000e+00> : vector<8xf32>
    %24 = vector.multi_reduction <add>, %23, %cst_12 [1] : vector<8x32xf32> to vector<8xf32>
    %25 = vector.shape_cast %24 : vector<8xf32> to vector<8x1xf32>
    %c40 = arith.constant 40 : index
    %c0_13 = arith.constant 0 : index
    %26 = vector.load %arg7[%c40, %c0_13] : memref<64x32xf32, #tpu.memory_space<vmem>>, vector<8x32xf32>
    %27 = arith.mulf %5, %26 : vector<8x32xf32>
    %cst_14 = arith.constant dense<0.000000e+00> : vector<8xf32>
    %28 = vector.multi_reduction <add>, %27, %cst_14 [1] : vector<8x32xf32> to vector<8xf32>
    %29 = vector.shape_cast %28 : vector<8xf32> to vector<8x1xf32>
    %c48 = arith.constant 48 : index
    %c0_15 = arith.constant 0 : index
    %30 = vector.load %arg7[%c48, %c0_15] : memref<64x32xf32, #tpu.memory_space<vmem>>, vector<8x32xf32>
    %31 = arith.mulf %5, %30 : vector<8x32xf32>
    %cst_16 = arith.constant dense<0.000000e+00> : vector<8xf32>
    %32 = vector.multi_reduction <add>, %31, %cst_16 [1] : vector<8x32xf32> to vector<8xf32>
    %33 = vector.shape_cast %32 : vector<8xf32> to vector<8x1xf32>
    %c56 = arith.constant 56 : index
    %c0_17 = arith.constant 0 : index
    %34 = vector.load %arg7[%c56, %c0_17] : memref<64x32xf32, #tpu.memory_space<vmem>>, vector<8x32xf32>
    %35 = arith.mulf %5, %34 : vector<8x32xf32>
    %cst_18 = arith.constant dense<0.000000e+00> : vector<8xf32>
    %36 = vector.multi_reduction <add>, %35, %cst_18 [1] : vector<8x32xf32> to vector<8xf32>
    %37 = vector.shape_cast %36 : vector<8xf32> to vector<8x1xf32>
    %38 = tpu.concatenate %9, %13, %17, %21, %25, %29, %33, %37 in 1 : vector<8x1xf32>, vector<8x1xf32>, vector<8x1xf32>, vector<8x1xf32>, vector<8x1xf32>, vector<8x1xf32>, vector<8x1xf32>, vector<8x1xf32> -> vector<8x8xf32>
    %39 = arith.negf %38 : vector<8x8xf32>
    %40 = math.exp %39 : vector<8x8xf32>
    %cst_19 = arith.constant 1.000000e+00 : f32
    %41 = vector.broadcast %cst_19 : f32 to vector<8x8xf32>
    %42 = arith.addf %41, %40 : vector<8x8xf32>
    %43 = arith.divf %41, %42 : vector<8x8xf32>
    %c0_20 = arith.constant 0 : index
    %c0_21 = arith.constant 0 : index
    %44 = vector.load %arg5[%c0_20, %c0_21] : memref<8x8xf32, #tpu.memory_space<vmem>>, vector<8x8xf32>
    tpu.vector_store %arg5[%c0_20, %c0_21], %43 {strides = array<i32>} : memref<8x8xf32, #tpu.memory_space<vmem>>, vector<8x8xf32>,
    return
  }
  func.func @transform_0(%arg0: i32, %arg1: memref<8xi32, #tpu.memory_space<smem>>, %arg2: memref<64xi32, #tpu.memory_space<smem>>) -> (i32, i32) {
    %c0_i32 = arith.constant 0 : i32
    %c0_i32_0 = arith.constant 0 : i32
    %c0_i32_1 = arith.constant 0 : i32
    return %c0_i32, %c0_i32_0 : i32, i32
  }
  func.func @transform_1(%arg0: i32, %arg1: memref<8xi32, #tpu.memory_space<smem>>, %arg2: memref<64xi32, #tpu.memory_space<smem>>) -> (i32, i32) {
    %c0_i32 = arith.constant 0 : i32
    %c0_i32_0 = arith.constant 0 : i32
    %c0_i32_1 = arith.constant 0 : i32
    return %c0_i32, %c0_i32_0 : i32, i32
  }
  func.func @transform_2(%arg0: i32, %arg1: memref<8xi32, #tpu.memory_space<smem>>, %arg2: memref<64xi32, #tpu.memory_space<smem>>) -> (i32, i32) {
    %c0_i32 = arith.constant 0 : i32
    %c0_i32_0 = arith.constant 0 : i32
    return %arg0, %c0_i32 : i32, i32
  }
}

</mosaic_0001>

<bundles_post_ra>
// kernel: tpu_custom_call.1
= control target key start
LH: loop header
LB: loop body
LE: loop exit
PB: predicated region body
PF: predicated region fallthrough
CT: control target
= control target key end

     0   :  { %s387_s0 = inlined_call_operand.vmem [shape: s32[8], index: 0, kind: input, shape index: {}]   ;;  %s388_s2 = inlined_call_operand.vmem [shape: f32[64,32], index: 2, kind: input, shape index: {}]   ;;  %s389_s3 = inlined_call_operand.vmem [shape: f32[64,32], index: 3, kind: input, shape index: {}]   ;;  %s390_s4 = inlined_call_operand.hbm [shape: f32[8,8], index: 4, kind: output, shape index: {}]   ;;  %s391_s1 = inlined_call_operand.vmem [shape: s32[64], index: 1, kind: input, shape index: {}]  }
   0x1   :  { %s9_s17 = sshll.u32 %s387_s0, 4  ;;  %s13_s20 = sshll.u32 %s391_s1, 4  ;;  %s10_s17 = int_to_ptr.vmem [resolvable:$true] %s9_s17  ;;  %s14_s20 = int_to_ptr.vmem [resolvable:$true] %s13_s20 }
   0x2   :  { %s228_s21 = scalar_lea.vmem %s10_s17, 16  ;;  %p233_p1 = scmp.lt.s32.totalorder %s10_s17, %s10_s17 }
   0x3   :  { %p229_p0 = scmp.ne.s32.totalorder %s10_s17, %s228_s21  ;;  %p234_p2 = scmp.lt.s32.totalorder %s228_s21, %s228_s21 }
   0x5   :  { %p235_p3 = por %p234_p2, %p233_p1 }
   0x7   :  { %p236_p4 = pnand %p235_p3, %p229_p0 }
   0x9   :  { %239 = shalt.err (!%p236_p4)  }
   0xa   :  { %s284_s22 = smov [#allocation5]   ;;  %s240_s23 = scalar_lea.vmem %s14_s20, 16 }
   0xb   :  { %12 = dma.vmem_to_smem %s10_s17, 16, %s284_s22, [#allocation4] }
   0xc   :  { %p241_p5 = scmp.ne.s32.totalorder %s14_s20, %s240_s23  ;;  %p245_p6 = scmp.lt.s32.totalorder %s14_s20, %s14_s20 }
   0xd   :  { %p246_p7 = scmp.lt.s32.totalorder %s240_s23, %s240_s23 }
   0xf   :  { %p247_p8 = por %p246_p7, %p245_p6 }
  0x11   :  { %p248_p9 = pnand %p247_p8, %p241_p5 }
  0x13   :  { %251 = shalt.err (!%p248_p9)  }
  0x14   :  { %s285_s0 = smov [#allocation6]  }
  0x15   :  { %16 = dma.vmem_to_smem %s14_s20, 16, %s285_s0, [#allocation4] }
  0x16   :  { %276 = dma.done.wait [#allocation4], 32 }
  0x17   :  { %277 = vsyncadd [#allocation4], 4294967264 }
  0x18   :  { %18 = sfence }
  0x19   :  { %19 = vsyncpa [#allocation8], 0  ;;  %s318_s1 = smov 0  }
  0x1a LB: > { %s35_s24 = sld [smem:[#allocation5 + %s282_s1]]  ;;  %s325_s25 = sshll.u32 %s282_s1, 3  ;;  %vm39_vm0 = vcmask 253952   ;;  %s282_s1 = sphi %s318_s1, %s31_s1  }
  0x1b   : > { %s42_s26 = sld [smem:[#allocation6 + %s325_s25]]  ;;  %s47_s27 = sadd.s32 1, %s325_s25 }
  0x1c   : > { %s48_s28 = sld [smem:[#allocation6 + %s47_s27]]  ;;  %s54_s29 = sadd.s32 2, %s325_s25 }
  0x1d   : > { %s55_s30 = sld [smem:[#allocation6 + %s54_s29]]  ;;  %s61_s5 = sadd.s32 3, %s325_s25 }
  0x1e   : > { %s62_s6 = sld [smem:[#allocation6 + %s61_s5]]  ;;  %s68_s7 = sadd.s32 4, %s325_s25 }
  0x1f   : > { %s69_s11 = sld [smem:[#allocation6 + %s68_s7]]  ;;  %s75_s12 = sadd.s32 5, %s325_s25 }
  0x20   : > { %s36_s10 = scalar_lea.vmem %s388_s2, %s35_s24  ;;  %s82_s13 = sadd.s32 6, %s325_s25 }
  0x21   : > { %v37_v0 = vld [vmem:[%s36_s10] sm:$0x1]  ;;  %s38_s14 = scalar_lea.vmem [#allocation2], %s282_s1  ;;  %s43_s17 = scalar_lea.vmem %s389_s3, %s42_s26 }
  0x22   : > { %40 = vst.msk [vmem:[%s38_s14] sm:$0x1] %vm39_vm0, %v37_v0  ;;  %s76_s18 = sld [smem:[#allocation6 + %s75_s12]]  ;;  %v44_v1 = vld [vmem:[%s43_s17] sm:$0x1]  ;;  %s49_s21 = scalar_lea.vmem %s389_s3, %s48_s28 }
  0x23   : > { %s83_s22 = sld [smem:[#allocation6 + %s82_s13]]  ;;  %s45_s23 = scalar_lea.vmem [#allocation3], %s282_s1  ;;  %v50_v2 = vld [vmem:[%s49_s21] sm:$0x1] }
  0x24   : > { %46 = vst.msk [vmem:[%s45_s23] sm:$0x1] %vm39_vm0, %v44_v1  ;;  %s56_s27 = scalar_lea.vmem %s389_s3, %s55_s30  ;;  %s89_s29 = sadd.s32 7, %s325_s25  ;;  %205 = vst.msk [vmem:[%s45_s23 + $0x8] sm:$0x1] %vm39_vm0, %v50_v2 }
  0x25   : > { %v57_v3 = vld [vmem:[%s56_s27] sm:$0x1]  ;;  %s63_s7 = scalar_lea.vmem %s389_s3, %s62_s6  ;;  %s90_s8 = sld [smem:[#allocation6 + %s89_s29]] }
  0x26   : > { %206 = vst.msk [vmem:[%s45_s23 + $0x10] sm:$0x1] %vm39_vm0, %v57_v3  ;;  %v64_v4 = vld [vmem:[%s63_s7] sm:$0x1]  ;;  %s70_s10 = scalar_lea.vmem %s389_s3, %s69_s11  ;;  %s31_s1 = sadd.s32 1, %s282_s1  }
  0x27   : > { %207 = vst.msk [vmem:[%s45_s23 + $0x18] sm:$0x1] %vm39_vm0, %v64_v4  ;;  %v71_v5 = vld [vmem:[%s70_s10] sm:$0x1]  ;;  %p30_p10 = scmp.ge.s32.totalorder %s31_s1, 2 }
  0x28   : > { %208 = vst.msk [vmem:[%s45_s23 + $0x20] sm:$0x1] %vm39_vm0, %v71_v5  ;;  %s77_s12 = scalar_lea.vmem %s389_s3, %s76_s18  ;;  %vm99_vm1 = vcmask (%p30_p10), 261120   ;;  %vm138_vm2 = vcmask (%p30_p10), 7168   ;;  %vm140_vm3 = vcmask (%p30_p10), 15360   ;;  %vm142_vm4 = vcmask (%p30_p10), 23552  }
  0x29   : > { %v78_v6 = vld [vmem:[%s77_s12] sm:$0x1]  ;;  %s84_s14 = scalar_lea.vmem %s389_s3, %s83_s22  ;;  %33 = sbr.rel (!%p30_p10) target bundleno = 26 (0x1a), region = 53  ;;  %vm144_vm5 = vcmask (%p30_p10), 31744   ;;  %vm146_vm6 = vcmask (%p30_p10), 39936   ;;  %vm148_vm7 = vcmask (%p30_p10), 48128  }
  0x2a   : > { %209 = vst.msk [vmem:[%s45_s23 + $0x28] sm:$0x1] %vm39_vm0, %v78_v6  ;;  %v85_v7 = vld [vmem:[%s84_s14] sm:$0x1]  ;;  %vm150_vm8 = vcmask (%p30_p10), 56320   ;;  %s286_s2 = smov (%p30_p10), [#allocation7]  }
  0x2b   : > { %210 = vst.msk [vmem:[%s45_s23 + $0x30] sm:$0x1] %vm39_vm0, %v85_v7  ;;  %s91_s16 = scalar_lea.vmem %s389_s3, %s90_s8  ;;  %v96_v9 = vld [vmem:[#allocation2] sm:$0xff] (%p30_p10)  ;;  %s166_s3 = sshll.u32 (%p30_p10), %s286_s2, 4  ;;  %vm158_vm9 = vcmask (%p30_p10), 64512   ;;  %s167_s3 = int_to_ptr.vmem [resolvable:$true] %s166_s3 }
  0x2c   : > { %v92_v8 = vld [vmem:[%s91_s16] sm:$0x1]  ;;  %s252_s1 = scalar_lea.vmem (%p30_p10), %s167_s3, 128  ;;  %p257_p12 = scmp.lt.s32.totalorder (%p30_p10), %s167_s3, %s167_s3 }
  0x2d   : > { %211 = vst.msk [vmem:[%s45_s23 + $0x38] sm:$0x1] %vm39_vm0, %v92_v8  ;;  %p253_p11 = scmp.ne.s32.totalorder (%p30_p10), %s167_s3, %s252_s1  ;;  %p258_p13 = scmp.lt.s32.totalorder (%p30_p10), %s252_s1, %s252_s1 }
  0x2f   :  { %p259_p0 = por %p258_p13, %p257_p12 }
  0x31   :  { %p260_p1 = pnand %p259_p0, %p253_p11 }
  0x34   :  { %v97_v10 = vld [vmem:[#allocation3] sm:$0xff]  ;;  %v108_v11 = vld [vmem:[#allocation3 + $0x10] sm:$0xff]  ;;  %v103_v14 = vld [vmem:[#allocation3 + $0x8] sm:$0xff] }
  0x35   :  { %v98_v12 = vmul.f32 %v97_v10, %v96_v9  ;;  %v109_v13 = vmul.f32 %v108_v11, %v96_v9  ;;  %v113_v15 = vld [vmem:[#allocation3 + $0x18] sm:$0xff]  ;;  %v104_v16 = vmul.f32 %v103_v14, %v96_v9  ;;  %v118_v18 = vld [vmem:[#allocation3 + $0x20] sm:$0xff]  ;;  %v123_v19 = vld [vmem:[#allocation3 + $0x28] sm:$0xff] }
  0x36   :  { %v114_v17 = vmul.f32 %v113_v15, %v96_v9  ;;  %v119_v24 = vmul.f32 %v118_v18, %v96_v9  ;;  %v124_v25 = vmul.f32 %v123_v19, %v96_v9  ;;  %v128_v26 = vld [vmem:[#allocation3 + $0x30] sm:$0xff]  ;;  %v133_v27 = vld [vmem:[#allocation3 + $0x38] sm:$0xff] }
  0x37   :  { %v100_v20 = vsel %vm99_vm1, %v98_v12, 0.0  ;;  %v110_v21 = vsel %vm99_vm1, %v109_v13, 0.0  ;;  %v105_v22 = vsel %vm99_vm1, %v104_v16, 0.0  ;;  %v129_v30 = vmul.f32 %v128_v26, %v96_v9 }
  0x38   :  { %101 = vadd.xlane.f32.xlu0 %v100_v20  ;;  %111 = vadd.xlane.f32.xlu1 %v110_v21  ;;  %v115_v23 = vsel %vm99_vm1, %v114_v17, 0.0  ;;  %v120_v28 = vsel %vm99_vm1, %v119_v24, 0.0  ;;  %v125_v29 = vsel %vm99_vm1, %v124_v25, 0.0  ;;  %v134_v31 = vmul.f32 %v133_v27, %v96_v9 }
  0x39   :  { %v130_v32 = vsel %vm99_vm1, %v129_v30, 0.0 }
  0x3a   :  { %v135_v33 = vsel %vm99_vm1, %v134_v31, 0.0 }
  0x3c   :  { %106 = vadd.xlane.f32.xlu0 %v105_v22  ;;  %116 = vadd.xlane.f32.xlu1 %v115_v23 }
  0x40   :  { %121 = vadd.xlane.f32.xlu0 %v120_v28  ;;  %126 = vadd.xlane.f32.xlu1 %v125_v29 }
  0x44   :  { %131 = vadd.xlane.f32.xlu0 %v130_v32  ;;  %136 = vadd.xlane.f32.xlu1 %v135_v33 }
  0xc1   :  { %v102_v34 = vpop.xlane.xlu0 %101  ;;  %v112_v35 = vpop.xlane.xlu1 %111 }
  0xc5   :  { %v107_v36 = vpop.xlane.xlu0 %106  ;;  %v117_v37 = vpop.xlane.xlu1 %116 }
  0xc6   :  { %v139_v38 = vsel %vm138_vm2, %v102_v34, %v107_v36 }
  0xc7   :  { %v141_v39 = vsel %vm140_vm3, %v139_v38, %v112_v35 }
  0xc8   :  { %v143_v40 = vsel %vm142_vm4, %v141_v39, %v117_v37 }
  0xc9   :  { %v122_v41 = vpop.xlane.xlu0 %121  ;;  %v127_v42 = vpop.xlane.xlu1 %126 }
  0xca   :  { %v145_v43 = vsel %vm144_vm5, %v143_v40, %v122_v41 }
  0xcb   :  { %v147_v44 = vsel %vm146_vm6, %v145_v43, %v127_v42 }
  0xcd   :  { %v132_v45 = vpop.xlane.xlu0 %131  ;;  %v137_v46 = vpop.xlane.xlu1 %136 }
  0xce   :  { %v149_v47 = vsel %vm148_vm7, %v147_v44, %v132_v45 }
  0xcf   :  { %v151_v48 = vsel %vm150_vm8, %v149_v47, %v137_v46 }
  0xd0   :  { %v212_v49 = vmul.f32 -1.442695, %v151_v48 }
  0xd2   :  { %224 = vpow2.f32 %v212_v49 }
  0xdf   :  { %v225_v50 = vpop.eup %224 }
  0xe0   :  { %v155_v51 = vadd.f32 1.0, %v225_v50 }
  0xe2   :  { %226 = vrcp.f32 %v155_v51 }
  0xef   :  { %v227_v52 = vpop.eup %226 }
  0xf0   :  { %159 = vst.msk [vmem:[#allocation7] sm:$0xff] %vm158_vm9, %v227_v52 }
  0xf1   :  { %263 = shalt.err (!%p260_p1)
}
  0xf2   :  { %169 = dma.vmem_to_hbm [thread:$0]  %s167_s3, 128, %s390_s4, [#allocation8]  }
  0xf3   :  { %278 = dma.done.wait [#allocation8], 128  }
  0xf4   :  { %279 = vsyncadd [#allocation8], 4294967168 }
  0xf5   :  { %173 = vsyncpa [#allocation8], 1 }

</bundles_post_ra>
